<compile_context>
chip_gen: v7x
topology: tpu7x:2x2x1
jax: 0.10.0
libtpu: 0.0.40
codegen_flags: <defaults>
</compile_context>

<pallas_src>
import functools

import jax
import jax.numpy as jnp
from jax import lax
from jax.experimental import pallas as pl
from jax.experimental.pallas import tpu as pltpu


def _round_up(n, m):
    return ((n + m - 1) // m) * m


def _masked_log_softmax(logits, valid_out):
    # Neutralize padded output lanes (statically skipped when there is no padding).
    if valid_out != logits.shape[-1]:
        col = lax.broadcasted_iota(jnp.int32, logits.shape, 1)
        logits = jnp.where(col < valid_out, logits, jnp.float32(-1e30))
    m = jnp.max(logits, axis=-1, keepdims=True)
    lse = m + jnp.log(jnp.sum(jnp.exp(logits - m), axis=-1, keepdims=True))
    return logits - lse


def mlp_classifier_kernel(valid_out, apply_dropout, x_ref, *rest):
    if apply_dropout:
        bits_ref, w1_ref, b1_ref, w2_ref, b2_ref, w3_ref, b3_ref, o_ref = rest
    else:
        w1_ref, b1_ref, w2_ref, b2_ref, w3_ref, b3_ref, o_ref = rest

    # lin1 + ReLU (bf16 MXU operands, f32 accumulation)
    x = x_ref[...].astype(jnp.bfloat16)
    h = jnp.dot(x, w1_ref[...], preferred_element_type=jnp.float32) + b1_ref[...]
    h = jnp.maximum(h, 0.0)

    if apply_dropout:
        bits = bits_ref[...]
        keep1 = (bits & 1) != 0     # dropout #1 mask
        keep2 = (bits & 2) != 0     # dropout #2 mask (independent bit of same word)
        # p=0.5 dropout: keep w.p. 0.5, scale kept values by 2 (fused select).
        h = jnp.where(keep1, h + h, 0.0)

    # lin2
    h = jnp.dot(h.astype(jnp.bfloat16), w2_ref[...],
                preferred_element_type=jnp.float32) + b2_ref[...]

    if apply_dropout:
        h = jnp.where(keep2, h + h, 0.0)

    # ReLU after the second dropout, matching the PyTorch module order.
    h = jnp.maximum(h, 0.0)

    # lin3 + log_softmax over dim=1 (last axis here)
    logits = jnp.dot(h.astype(jnp.bfloat16), w3_ref[...],
                     preferred_element_type=jnp.float32) + b3_ref[...]
    o_ref[...] = _masked_log_softmax(logits, valid_out)


def linear_classifier_kernel(valid_out, x_ref, w_ref, b_ref, o_ref):
    logits = jnp.dot(x_ref[...].astype(jnp.bfloat16), w_ref[...],
                     preferred_element_type=jnp.float32) + b_ref[...]
    o_ref[...] = _masked_log_softmax(logits, valid_out)


def init_linear_params(key, in_dim, out_dim):
    """PyTorch nn.Linear default init: U(-1/sqrt(in), 1/sqrt(in)). Stored as (in, out)."""
    kw, kb = jax.random.split(key)
    bound = 1.0 / jnp.sqrt(jnp.float32(in_dim))
    w = jax.random.uniform(kw, (in_dim, out_dim), jnp.float32, -bound, bound)
    b = jax.random.uniform(kb, (1, out_dim), jnp.float32, -bound, bound)
    return w, b


def _pad2(a, rows, cols):
    return jnp.pad(a, ((0, rows - a.shape[0]), (0, cols - a.shape[1])))


def classifier_forward(x, params, use_non_linear, dropout_seed=0, training=True):
    """x: (B, input_dim) float32. Returns (B, output_dim) log-probabilities."""
    B, in_dim = x.shape
    TB = min(_round_up(B, 8), 256)          # batch tile: multiple of 8 sublanes
    B_pad = _round_up(B, TB)
    in_pad = _round_up(in_dim, 128)

    x_p = _pad2(x.astype(jnp.float32), B_pad, in_pad)
    grid = (B_pad // TB,)

    if use_non_linear:
        (w1, b1), (w2, b2), (w3, b3) = params
        hid = w1.shape[1]
        out_dim = w3.shape[1]
        h_pad = _round_up(hid, 128)
        out_pad = _round_up(out_dim, 128)

        # Weights bf16 (halves VMEM / HBM traffic, native MXU dtype); biases stay f32.
        w1p = _pad2(w1, in_pad, h_pad).astype(jnp.bfloat16)
        b1p = _pad2(b1, 1, h_pad)
        w2p = _pad2(w2, h_pad, h_pad).astype(jnp.bfloat16)
        b2p = _pad2(b2, 1, h_pad)
        w3p = _pad2(w3, h_pad, out_pad).astype(jnp.bfloat16)
        b3p = _pad2(b3, 1, out_pad)

        apply_dropout = bool(training)

        operands = [x_p]
        in_specs = [pl.BlockSpec((TB, in_pad), lambda i: (i, 0))]        # x
        bits_bytes = 0
        if apply_dropout:
            # One uint32 random word per hidden activation; bit0 -> mask1, bit1 -> mask2.
            bits = jax.random.bits(jax.random.PRNGKey(dropout_seed), (B_pad, h_pad),
                                   jnp.uint32)
            operands.append(bits)
            in_specs.append(pl.BlockSpec((TB, h_pad), lambda i: (i, 0)))  # dropout bits
            bits_bytes = bits.size * 4

        operands += [w1p, b1p, w2p, b2p, w3p, b3p]
        in_specs += [
            pl.BlockSpec((in_pad, h_pad), lambda i: (0, 0)),    # w1 (resident)
            pl.BlockSpec((1, h_pad), lambda i: (0, 0)),         # b1
            pl.BlockSpec((h_pad, h_pad), lambda i: (0, 0)),     # w2
            pl.BlockSpec((1, h_pad), lambda i: (0, 0)),         # b2
            pl.BlockSpec((h_pad, out_pad), lambda i: (0, 0)),   # w3
            pl.BlockSpec((1, out_pad), lambda i: (0, 0)),       # b3
        ]

        kernel = functools.partial(mlp_classifier_kernel, out_dim, apply_dropout)

        cost = pl.CostEstimate(
            flops=2 * B_pad * (in_pad * h_pad + h_pad * h_pad + h_pad * out_pad),
            transcendentals=B_pad * out_pad,
            bytes_accessed=(x_p.size * 4 + bits_bytes
                            + (w1p.size + w2p.size + w3p.size) * 2
                            + (b1p.size + b2p.size + b3p.size) * 4
                            + B_pad * out_pad * 4),
        )

        out = pl.pallas_call(
            kernel,
            out_shape=jax.ShapeDtypeStruct((B_pad, out_pad), jnp.float32),
            grid=grid,
            in_specs=in_specs,
            out_specs=pl.BlockSpec((TB, out_pad), lambda i: (i, 0)),
            compiler_params=pltpu.CompilerParams(
                dimension_semantics=("parallel",)),
            cost_estimate=cost,
        )(*operands)
    else:
        (w, b), = params
        out_dim = w.shape[1]
        out_pad = _round_up(out_dim, 128)
        wp = _pad2(w, in_pad, out_pad).astype(jnp.bfloat16)
        bp = _pad2(b, 1, out_pad)

        kernel = functools.partial(linear_classifier_kernel, out_dim)
        cost = pl.CostEstimate(
            flops=2 * B_pad * in_pad * out_pad,
            transcendentals=B_pad * out_pad,
            bytes_accessed=x_p.size * 4 + wp.size * 2 + bp.size * 4
                           + B_pad * out_pad * 4,
        )

        out = pl.pallas_call(
            kernel,
            out_shape=jax.ShapeDtypeStruct((B_pad, out_pad), jnp.float32),
            grid=grid,
            in_specs=[
                pl.BlockSpec((TB, in_pad), lambda i: (i, 0)),       # x
                pl.BlockSpec((in_pad, out_pad), lambda i: (0, 0)),  # w (resident)
                pl.BlockSpec((1, out_pad), lambda i: (0, 0)),       # b
            ],
            out_specs=pl.BlockSpec((TB, out_pad), lambda i: (i, 0)),
            compiler_params=pltpu.CompilerParams(
                dimension_semantics=("parallel",)),
            cost_estimate=cost,
        )(x_p, wp, bp)

    # Strip batch and lane padding back to the logical shape.
    return out[:B, :out_dim]


if __name__ == "__main__":
    # Small, deterministic example consistent with the module's forward.
    B, INPUT_DIM, HIDDEN_DIM, OUTPUT_DIM = 2, 32, 32, 16

    key = jax.random.PRNGKey(0)
    kx, k1, k2, k3, k4 = jax.random.split(key, 5)

    x = jax.random.normal(kx, (B, INPUT_DIM), jnp.float32)

    # use_non_linear = True path (3 linear layers, ReLU, dropout, log_softmax),
    # training (F.dropout default) semantics.
    p1 = init_linear_params(k1, INPUT_DIM, HIDDEN_DIM)
    p2 = init_linear_params(k2, HIDDEN_DIM, HIDDEN_DIM)
    p3 = init_linear_params(k3, HIDDEN_DIM, OUTPUT_DIM)
    out_nl = classifier_forward(x, (p1, p2, p3), use_non_linear=True, dropout_seed=42)
    out_nl = jax.block_until_ready(out_nl)
    assert out_nl.shape == (B, OUTPUT_DIM)
    assert bool(jnp.all(jnp.isfinite(out_nl)))
    row_sums_nl = jnp.sum(jnp.exp(out_nl), axis=1)
    assert bool(jnp.all(jnp.abs(row_sums_nl - 1.0) < 1e-3))

    # Same path with dropout statically disabled (inference variant: no bits stream).
    out_eval = classifier_forward(x, (p1, p2, p3), use_non_linear=True, training=False)
    out_eval = jax.block_until_ready(out_eval)
    assert out_eval.shape == (B, OUTPUT_DIM)
    assert bool(jnp.all(jnp.isfinite(out_eval)))
    row_sums_ev = jnp.sum(jnp.exp(out_eval), axis=1)
    assert bool(jnp.all(jnp.abs(row_sums_ev - 1.0) < 1e-3))

    # use_non_linear = False path (single linear layer + log_softmax)
    p_lin = init_linear_params(k4, INPUT_DIM, OUTPUT_DIM)
    out_lin = classifier_forward(x, (p_lin,), use_non_linear=False)
    out_lin = jax.block_until_ready(out_lin)
    assert out_lin.shape == (B, OUTPUT_DIM)
    row_sums = jnp.sum(jnp.exp(out_lin), axis=1)
    assert bool(jnp.all(jnp.abs(row_sums - 1.0) < 1e-3))

    print("KERNEL_OK")
</pallas_src>

<mosaic_0001>
module attributes {stable_mosaic.version = 11 : i64} {
  func.func @mlp_classifier_kernel(%arg0: i32, %arg1: memref<8x128xf32, #tpu.memory_space<vmem>>, %arg2: memref<8x128xi32, #tpu.memory_space<vmem>>, %arg3: memref<128x128xbf16, #tpu.memory_space<vmem>>, %arg4: memref<1x128xf32, #tpu.memory_space<vmem>>, %arg5: memref<128x128xbf16, #tpu.memory_space<vmem>>, %arg6: memref<1x128xf32, #tpu.memory_space<vmem>>, %arg7: memref<128x128xbf16, #tpu.memory_space<vmem>>, %arg8: memref<1x128xf32, #tpu.memory_space<vmem>>, %arg9: memref<8x128xf32, #tpu.memory_space<vmem>>) attributes {dimension_semantics = [#tpu.dimension_semantics<parallel>], iteration_bounds = array<i64: 1>, scalar_prefetch = 0 : i64, scratch_operands = 0 : i64, tpu.core_type = #tpu.core_type<tc>, window_params = [{transform_indices = @transform_0, window_bounds = array<i64: 8, 128>}, {transform_indices = @transform_1, window_bounds = array<i64: 8, 128>}, {pipeline_mode = #tpu.pipeline_mode<synchronous>, transform_indices = @transform_2, window_bounds = array<i64: 128, 128>}, {pipeline_mode = #tpu.pipeline_mode<synchronous>, transform_indices = @transform_3, window_bounds = array<i64: 1, 128>}, {pipeline_mode = #tpu.pipeline_mode<synchronous>, transform_indices = @transform_4, window_bounds = array<i64: 128, 128>}, {pipeline_mode = #tpu.pipeline_mode<synchronous>, transform_indices = @transform_5, window_bounds = array<i64: 1, 128>}, {pipeline_mode = #tpu.pipeline_mode<synchronous>, transform_indices = @transform_6, window_bounds = array<i64: 128, 128>}, {pipeline_mode = #tpu.pipeline_mode<synchronous>, transform_indices = @transform_7, window_bounds = array<i64: 1, 128>}, {transform_indices = @transform_8, window_bounds = array<i64: 8, 128>}]} {
    %c0 = arith.constant 0 : index
    %c0_0 = arith.constant 0 : index
    %0 = vector.load %arg1[%c0, %c0_0] : memref<8x128xf32, #tpu.memory_space<vmem>>, vector<8x128xf32>
    %1 = arith.truncf %0 : vector<8x128xf32> to vector<8x128xbf16>
    %c0_1 = arith.constant 0 : index
    %c0_2 = arith.constant 0 : index
    %2 = vector.load %arg3[%c0_1, %c0_2] : memref<128x128xbf16, #tpu.memory_space<vmem>>, vector<128x128xbf16>
    %cst = arith.constant dense<0.000000e+00> : vector<8x128xf32>
    %3 = tpu.matmul %1, %2, %cst {dimension_numbers = #tpu.dot_dimension_numbers<[1], [0], [0], [1], [0, 0, 1, 1], [], []>} : vector<8x128xbf16>, vector<128x128xbf16>, vector<8x128xf32> -> vector<8x128xf32>
    %c0_3 = arith.constant 0 : index
    %c0_4 = arith.constant 0 : index
    %4 = vector.load %arg4[%c0_3, %c0_4] : memref<1x128xf32, #tpu.memory_space<vmem>>, vector<1x128xf32>
    %5 = vector.broadcast %4 : vector<1x128xf32> to vector<8x128xf32>
    %6 = arith.addf %3, %5 : vector<8x128xf32>
    %cst_5 = arith.constant 0.000000e+00 : f32
    %7 = vector.broadcast %cst_5 : f32 to vector<8x128xf32>
    %8 = arith.maximumf %6, %7 : vector<8x128xf32>
    %c0_6 = arith.constant 0 : index
    %c0_7 = arith.constant 0 : index
    %9 = vector.load %arg2[%c0_6, %c0_7] : memref<8x128xi32, #tpu.memory_space<vmem>>, vector<8x128xi32>
    %c1_i32 = arith.constant 1 : i32
    %10 = vector.broadcast %c1_i32 : i32 to vector<8x128xi32>
    %11 = arith.andi %9, %10 : vector<8x128xi32>
    %c0_i32 = arith.constant 0 : i32
    %12 = vector.broadcast %c0_i32 : i32 to vector<8x128xi32>
    %13 = arith.cmpi ne, %11, %12 : vector<8x128xi32>
    %c2_i32 = arith.constant 2 : i32
    %14 = vector.broadcast %c2_i32 : i32 to vector<8x128xi32>
    %15 = arith.andi %9, %14 : vector<8x128xi32>
    %c0_i32_8 = arith.constant 0 : i32
    %16 = vector.broadcast %c0_i32_8 : i32 to vector<8x128xi32>
    %17 = arith.cmpi ne, %15, %16 : vector<8x128xi32>
    %18 = arith.addf %8, %8 : vector<8x128xf32>
    %cst_9 = arith.constant 0.000000e+00 : f32
    %19 = vector.broadcast %cst_9 : f32 to vector<8x128xf32>
    %20 = arith.select %13, %18, %19 : vector<8x128xi1>, vector<8x128xf32>
    %21 = arith.truncf %20 : vector<8x128xf32> to vector<8x128xbf16>
    %c0_10 = arith.constant 0 : index
    %c0_11 = arith.constant 0 : index
    %22 = vector.load %arg5[%c0_10, %c0_11] : memref<128x128xbf16, #tpu.memory_space<vmem>>, vector<128x128xbf16>
    %cst_12 = arith.constant dense<0.000000e+00> : vector<8x128xf32>
    %23 = tpu.matmul %21, %22, %cst_12 {dimension_numbers = #tpu.dot_dimension_numbers<[1], [0], [0], [1], [0, 0, 1, 1], [], []>} : vector<8x128xbf16>, vector<128x128xbf16>, vector<8x128xf32> -> vector<8x128xf32>
    %c0_13 = arith.constant 0 : index
    %c0_14 = arith.constant 0 : index
    %24 = vector.load %arg6[%c0_13, %c0_14] : memref<1x128xf32, #tpu.memory_space<vmem>>, vector<1x128xf32>
    %25 = vector.broadcast %24 : vector<1x128xf32> to vector<8x128xf32>
    %26 = arith.addf %23, %25 : vector<8x128xf32>
    %27 = arith.addf %26, %26 : vector<8x128xf32>
    %cst_15 = arith.constant 0.000000e+00 : f32
    %28 = vector.broadcast %cst_15 : f32 to vector<8x128xf32>
    %29 = arith.select %17, %27, %28 : vector<8x128xi1>, vector<8x128xf32>
    %cst_16 = arith.constant 0.000000e+00 : f32
    %30 = vector.broadcast %cst_16 : f32 to vector<8x128xf32>
    %31 = arith.maximumf %29, %30 : vector<8x128xf32>
    %32 = arith.truncf %31 : vector<8x128xf32> to vector<8x128xbf16>
    %c0_17 = arith.constant 0 : index
    %c0_18 = arith.constant 0 : index
    %33 = vector.load %arg7[%c0_17, %c0_18] : memref<128x128xbf16, #tpu.memory_space<vmem>>, vector<128x128xbf16>
    %cst_19 = arith.constant dense<0.000000e+00> : vector<8x128xf32>
    %34 = tpu.matmul %32, %33, %cst_19 {dimension_numbers = #tpu.dot_dimension_numbers<[1], [0], [0], [1], [0, 0, 1, 1], [], []>} : vector<8x128xbf16>, vector<128x128xbf16>, vector<8x128xf32> -> vector<8x128xf32>
    %c0_20 = arith.constant 0 : index
    %c0_21 = arith.constant 0 : index
    %35 = vector.load %arg8[%c0_20, %c0_21] : memref<1x128xf32, #tpu.memory_space<vmem>>, vector<1x128xf32>
    %36 = vector.broadcast %35 : vector<1x128xf32> to vector<8x128xf32>
    %37 = arith.addf %34, %36 : vector<8x128xf32>
    %38 = tpu.iota {dimensions = array<i32: 1>} : vector<8x128xi32>
    %c16_i32 = arith.constant 16 : i32
    %39 = vector.broadcast %c16_i32 : i32 to vector<8x128xi32>
    %40 = arith.cmpi slt, %38, %39 : vector<8x128xi32>
    %cst_22 = arith.constant -1.000000e+30 : f32
    %41 = vector.broadcast %cst_22 : f32 to vector<8x128xf32>
    %42 = arith.select %40, %37, %41 : vector<8x128xi1>, vector<8x128xf32>
    %cst_23 = arith.constant dense<0xFF800000> : vector<8xf32>
    %43 = vector.multi_reduction <maximumf>, %42, %cst_23 [1] : vector<8x128xf32> to vector<8xf32>
    %44 = vector.shape_cast %43 : vector<8xf32> to vector<8x1xf32>
    %45 = vector.broadcast %44 : vector<8x1xf32> to vector<8x128xf32>
    %46 = arith.subf %42, %45 : vector<8x128xf32>
    %47 = math.exp %46 : vector<8x128xf32>
    %cst_24 = arith.constant dense<0.000000e+00> : vector<8xf32>
    %48 = vector.multi_reduction <add>, %47, %cst_24 [1] : vector<8x128xf32> to vector<8xf32>
    %49 = vector.shape_cast %48 : vector<8xf32> to vector<8x1xf32>
    %50 = math.log %49 : vector<8x1xf32>
    %51 = arith.addf %44, %50 : vector<8x1xf32>
    %52 = vector.broadcast %51 : vector<8x1xf32> to vector<8x128xf32>
    %53 = arith.subf %42, %52 : vector<8x128xf32>
    %c0_25 = arith.constant 0 : index
    %c0_26 = arith.constant 0 : index
    %54 = vector.load %arg9[%c0_25, %c0_26] : memref<8x128xf32, #tpu.memory_space<vmem>>, vector<8x128xf32>
    tpu.vector_store %arg9[%c0_25, %c0_26], %53 {strides = array<i32>} : memref<8x128xf32, #tpu.memory_space<vmem>>, vector<8x128xf32>,
    return
  }
  func.func @transform_0(%arg0: i32) -> (i32, i32) {
    %c0_i32 = arith.constant 0 : i32
    %c0_i32_0 = arith.constant 0 : i32
    return %arg0, %c0_i32 : i32, i32
  }
  func.func @transform_1(%arg0: i32) -> (i32, i32) {
    %c0_i32 = arith.constant 0 : i32
    %c0_i32_0 = arith.constant 0 : i32
    return %arg0, %c0_i32 : i32, i32
  }
  func.func @transform_2(%arg0: i32) -> (i32, i32) {
    %c0_i32 = arith.constant 0 : i32
    %c0_i32_0 = arith.constant 0 : i32
    %c0_i32_1 = arith.constant 0 : i32
    return %c0_i32, %c0_i32_0 : i32, i32
  }
  func.func @transform_3(%arg0: i32) -> (i32, i32) {
    %c0_i32 = arith.constant 0 : i32
    %c0_i32_0 = arith.constant 0 : i32
    %c0_i32_1 = arith.constant 0 : i32
    return %c0_i32, %c0_i32_0 : i32, i32
  }
  func.func @transform_4(%arg0: i32) -> (i32, i32) {
    %c0_i32 = arith.constant 0 : i32
    %c0_i32_0 = arith.constant 0 : i32
    %c0_i32_1 = arith.constant 0 : i32
    return %c0_i32, %c0_i32_0 : i32, i32
  }
  func.func @transform_5(%arg0: i32) -> (i32, i32) {
    %c0_i32 = arith.constant 0 : i32
    %c0_i32_0 = arith.constant 0 : i32
    %c0_i32_1 = arith.constant 0 : i32
    return %c0_i32, %c0_i32_0 : i32, i32
  }
  func.func @transform_6(%arg0: i32) -> (i32, i32) {
    %c0_i32 = arith.constant 0 : i32
    %c0_i32_0 = arith.constant 0 : i32
    %c0_i32_1 = arith.constant 0 : i32
    return %c0_i32, %c0_i32_0 : i32, i32
  }
  func.func @transform_7(%arg0: i32) -> (i32, i32) {
    %c0_i32 = arith.constant 0 : i32
    %c0_i32_0 = arith.constant 0 : i32
    %c0_i32_1 = arith.constant 0 : i32
    return %c0_i32, %c0_i32_0 : i32, i32
  }
  func.func @transform_8(%arg0: i32) -> (i32, i32) {
    %c0_i32 = arith.constant 0 : i32
    %c0_i32_0 = arith.constant 0 : i32
    return %arg0, %c0_i32 : i32, i32
  }
}

</mosaic_0001>

<bundles_post_ra>
// kernel: tpu_custom_call.1
= control target key start
LH: loop header
LB: loop body
LE: loop exit
PB: predicated region body
PF: predicated region fallthrough
CT: control target
= control target key end

     0   :  { %13 = vsyncpa [#allocation3], 0  ;;  %s946_s0 = inlined_call_operand.hbm [shape: f32[8,128], index: 0, kind: input, shape index: {}]   ;;  %s947_s1 = inlined_call_operand.hbm [shape: u32[8,128], index: 1, kind: input, shape index: {}]   ;;  %s948_s2 = inlined_call_operand.hbm [shape: bf16[128,128], index: 2, kind: input, shape index: {}]   ;;  %s949_s3 = inlined_call_operand.vmem [shape: f32[1,128], index: 3, kind: input, shape index: {}]   ;;  %s950_s4 = inlined_call_operand.hbm [shape: bf16[128,128], index: 4, kind: input, shape index: {}]   ;;  %s951_s5 = inlined_call_operand.vmem [shape: f32[1,128], index: 5, kind: input, shape index: {}]   ;;  %s952_s6 = inlined_call_operand.hbm [shape: bf16[128,128], index: 6, kind: input, shape index: {}]   ;;  %s953_s7 = inlined_call_operand.vmem [shape: f32[1,128], index: 7, kind: input, shape index: {}]   ;;  %s954_s8 = inlined_call_operand.hbm [shape: f32[8,128], index: 8, kind: output, shape index: {}]  }
   0x1   :  { %14 = vsyncpa [#allocation6], 0 }
   0x2   :  { %15 = vsyncpa [#allocation9], 0 }
   0x3   :  { %16 = vsyncpa [#allocation4], 0  ;;  %s771_s27 = smov [#allocation5]   ;;  %s631_s9 = scalar_lea.hbm %s947_s1, 128 }
   0x4   :  { %s33_s28 = sshll.u32 %s771_s27, 4  ;;  %p632_p0 = scmp.ne.s32.totalorder %s947_s1, %s631_s9  ;;  %s34_s28 = int_to_ptr.vmem [resolvable:$true] %s33_s28 }
   0x5   :  { %p635_p1 = scmp.lt.u32.totalorder %s631_s9, %s947_s1 }
   0x7   :  { %p637_p2 = pnand %p635_p1, %p632_p0 }
   0x9   :  { %640 = shalt.err (!%p637_p2)
}
   0xa   :  { %s641_s14 = scalar_lea.vmem %s34_s28, 128  ;;  %p646_p4 = scmp.lt.s32.totalorder %s34_s28, %s34_s28 }
   0xb   :  { %p642_p3 = scmp.ne.s32.totalorder %s34_s28, %s641_s14  ;;  %p647_p5 = scmp.lt.s32.totalorder %s641_s14, %s641_s14 }
   0xd   :  { %p648_p6 = por %p647_p5, %p646_p4 }
   0xf   :  { %p649_p7 = pnand %p648_p6, %p642_p3 }
  0x11   :  { %652 = shalt.err (!%p649_p7)
}
  0x12   :  { %36 = dma.hbm_to_vmem [thread:$0]  %s947_s1, 128, %s34_s28, [#allocation6]  }
  0x13   :  { %s772_s17 = smov [#allocation8]   ;;  %s773_s19 = smov [#allocation2]  }
  0x14   :  { %s56_s18 = sshll.u32 %s772_s17, 4  ;;  %s23_s20 = sshll.u32 %s773_s19, 4  ;;  %s57_s18 = int_to_ptr.vmem [resolvable:$true] %s56_s18  ;;  %s24_s20 = int_to_ptr.vmem [resolvable:$true] %s23_s20 }
  0x15   :  { %s653_s23 = scalar_lea.hbm %s950_s4, 1024 }
  0x16   :  { %p654_p8 = scmp.ne.s32.totalorder %s950_s4, %s653_s23  ;;  %p657_p9 = scmp.lt.u32.totalorder %s653_s23, %s950_s4 }
  0x18   :  { %p659_p10 = pnand %p657_p9, %p654_p8 }
  0x1a   :  { %662 = shalt.err (!%p659_p10)
}
  0x1b   :  { %s663_s1 = scalar_lea.vmem %s57_s18, 1024  ;;  %p668_p12 = scmp.lt.s32.totalorder %s57_s18, %s57_s18 }
  0x1c   :  { %p664_p11 = scmp.ne.s32.totalorder %s57_s18, %s663_s1  ;;  %p669_p13 = scmp.lt.s32.totalorder %s663_s1, %s663_s1 }
  0x1e   :  { %p670_p0 = por %p669_p13, %p668_p12 }
  0x20   :  { %p671_p1 = pnand %p670_p0, %p664_p11 }
  0x22   :  { %674 = shalt.err (!%p671_p1)
}
  0x23   :  { %s774_s28 = smov 64   ;;  %s775_s29 = smov 4  }
  0x24   :  { %62 = dma.hbm_to_vmem [thread:$0]  %s950_s4, 1024, %s57_s18, [#allocation9], %s774_s28, %s774_s28, %s775_s29  }
  0x25   :  { %s675_s12 = scalar_lea.hbm %s946_s0, 128 }
  0x26   :  { %p676_p2 = scmp.ne.s32.totalorder %s946_s0, %s675_s12  ;;  %p679_p3 = scmp.lt.u32.totalorder %s675_s12, %s946_s0 }
  0x28   :  { %p681_p4 = pnand %p679_p3, %p676_p2 }
  0x2a   :  { %684 = shalt.err (!%p681_p4)
}
  0x2b   :  { %s685_s17 = scalar_lea.vmem %s24_s20, 128  ;;  %p690_p6 = scmp.lt.s32.totalorder %s24_s20, %s24_s20 }
  0x2c   :  { %p686_p5 = scmp.ne.s32.totalorder %s24_s20, %s685_s17  ;;  %p691_p7 = scmp.lt.s32.totalorder %s685_s17, %s685_s17 }
  0x2e   :  { %p692_p8 = por %p691_p7, %p690_p6 }
  0x30   :  { %p693_p9 = pnand %p692_p8, %p686_p5 }
  0x32   :  { %696 = shalt.err (!%p693_p9)
}
  0x33   :  { %26 = dma.hbm_to_vmem [thread:$0]  %s946_s0, 128, %s24_s20, [#allocation3]  }
  0x34   :  { %s776_s19 = smov [#allocation7]   ;;  %s777_s22 = smov [#allocation10]  }
  0x35   :  { %s42_s21 = sshll.u32 %s776_s19, 4  ;;  %s70_s23 = sshll.u32 %s777_s22, 4  ;;  %s43_s21 = int_to_ptr.vmem [resolvable:$true] %s42_s21  ;;  %s71_s23 = int_to_ptr.vmem [resolvable:$true] %s70_s23 }
  0x36   :  { %s697_s26 = scalar_lea.hbm %s948_s2, 1024 }
  0x37   :  { %p698_p10 = scmp.ne.s32.totalorder %s948_s2, %s697_s26  ;;  %p701_p11 = scmp.lt.u32.totalorder %s697_s26, %s948_s2 }
  0x39   :  { %p703_p12 = pnand %p701_p11, %p698_p10 }
  0x3b   :  { %706 = shalt.err (!%p703_p12)
}
  0x3c   :  { %s707_s0 = scalar_lea.vmem %s43_s21, 1024  ;;  %p712_p0 = scmp.lt.s32.totalorder %s43_s21, %s43_s21 }
  0x3d   :  { %p708_p13 = scmp.ne.s32.totalorder %s43_s21, %s707_s0  ;;  %p713_p1 = scmp.lt.s32.totalorder %s707_s0, %s707_s0 }
  0x3f   :  { %p714_p2 = por %p713_p1, %p712_p0 }
  0x41   :  { %p715_p3 = pnand %p714_p2, %p708_p13 }
  0x43   :  { %718 = shalt.err (!%p715_p3)
}
  0x44   :  { %48 = dma.hbm_to_vmem [thread:$0]  %s948_s2, 1024, %s43_s21, [#allocation6], %s774_s28, %s774_s28, %s775_s29  }
  0x45   :  { %s719_s13 = scalar_lea.hbm %s952_s6, 1024 }
  0x46   :  { %p720_p4 = scmp.ne.s32.totalorder %s952_s6, %s719_s13  ;;  %p723_p5 = scmp.lt.u32.totalorder %s719_s13, %s952_s6 }
  0x48   :  { %p725_p6 = pnand %p723_p5, %p720_p4 }
  0x4a   :  { %728 = shalt.err (!%p725_p6)
}
  0x4b   :  { %s729_s4 = scalar_lea.vmem %s71_s23, 1024  ;;  %p734_p8 = scmp.lt.s32.totalorder %s71_s23, %s71_s23 }
  0x4c   :  { %p730_p7 = scmp.ne.s32.totalorder %s71_s23, %s729_s4  ;;  %p735_p9 = scmp.lt.s32.totalorder %s729_s4, %s729_s4 }
  0x4e   :  { %p736_p10 = por %p735_p9, %p734_p8 }
  0x50   :  { %p737_p11 = pnand %p736_p10, %p730_p7 }
  0x52   :  { %740 = shalt.err (!%p737_p11)
}
  0x53   :  { %76 = dma.hbm_to_vmem [thread:$0]  %s952_s6, 1024, %s71_s23, [#allocation9], %s774_s28, %s774_s28, %s775_s29  }
  0x54   :  { %763 = dma.done.wait [#allocation3], 128  }
  0x55   :  { %764 = vsyncadd [#allocation3], 4294967168 }
  0x56   :  { %765 = dma.done.wait [#allocation6], 1152  }
  0x57   :  { %766 = vsyncadd [#allocation6], 4294966144 }
  0x58   :  { %767 = dma.done.wait [#allocation9], 2048  }
  0x59   :  { %768 = vsyncadd [#allocation9], 4294965248  ;;  %v778_v0 = vmov 0.0   ;;  %vm779_vm0 = vmmov 0   ;;  %v603_v1 = vld [vmem:[#allocation7] sm:$0xff]   ;;  %v604_v2 = vld [vmem:[#allocation7 + $0x8] sm:$0xff]   ;;  %v443_v49 = vlaneseq }
  0x5a   :  { %533 = vmatprep.subr.bf16.mxu0 %v778_v0  ;;  %549 = vmatprep.mubr.msk.bf16.mxu0 %vm779_vm0, %v778_v0  ;;  %v605_v3 = vld [vmem:[#allocation7 + $0x10] sm:$0xff]   ;;  %v611_v4 = vld [vmem:[#allocation8] sm:$0xff]   ;;  %v606_v5 = vld [vmem:[#allocation7 + $0x18] sm:$0xff]  }
  0x5b   :  { %553 = vmatprep.subr.bf16.mxu1 %v778_v0  ;;  %569 = vmatprep.mubr.msk.bf16.mxu1 %vm779_vm0, %v778_v0  ;;  %v612_v6 = vld [vmem:[#allocation8 + $0x8] sm:$0xff]   ;;  %v607_v7 = vld [vmem:[#allocation7 + $0x20] sm:$0xff]   ;;  %v613_v8 = vld [vmem:[#allocation8 + $0x10] sm:$0xff]   ;;  %v444_v50 = vand.u32 127, %v443_v49 }
  0x5c   :  { %534 = vmatpush3.bf16.msra.mxu0 %v603_v1  ;;  %554 = vmatpush3.bf16.msra.mxu1 %v611_v4  ;;  %v608_v9 = vld [vmem:[#allocation7 + $0x28] sm:$0xff]   ;;  %v614_v10 = vld [vmem:[#allocation8 + $0x18] sm:$0xff]   ;;  %v609_v11 = vld [vmem:[#allocation7 + $0x30] sm:$0xff]  }
  0x5d   :  { %535 = vmatprep.subr.bf16.mxu0 %v778_v0  ;;  %555 = vmatprep.subr.bf16.mxu1 %v778_v0  ;;  %v615_v12 = vld [vmem:[#allocation8 + $0x20] sm:$0xff]   ;;  %v610_v13 = vld [vmem:[#allocation7 + $0x38] sm:$0xff]   ;;  %v95_v14 = vld [vmem:[#allocation2] sm:$0xff]  ;;  %vm445_vm4 = vcmp.lt.s32.totalorder %v444_v50, 16 }
  0x5e   :  { %v616_v15 = vld [vmem:[#allocation8 + $0x28] sm:$0xff]   ;;  %v96_v16 = vpack.c.bf16 %v95_v14, %v95_v14  ;;  %v617_v17 = vld [vmem:[#allocation8 + $0x30] sm:$0xff]   ;;  %v618_v18 = vld [vmem:[#allocation8 + $0x38] sm:$0xff]  }
  0x5f   :  { %v619_v19 = vld [vmem:[#allocation10] sm:$0xff]   ;;  %v620_v20 = vld [vmem:[#allocation10 + $0x8] sm:$0xff]   ;;  %v621_v21 = vld [vmem:[#allocation10 + $0x10] sm:$0xff]  }
  0x60   :  { %536 = vmatpush3.bf16.msra.mxu0 %v604_v2  ;;  %556 = vmatpush3.bf16.msra.mxu1 %v612_v6  ;;  %v622_v22 = vld [vmem:[#allocation10 + $0x18] sm:$0xff]   ;;  %v623_v23 = vld [vmem:[#allocation10 + $0x20] sm:$0xff]   ;;  %v624_v24 = vld [vmem:[#allocation10 + $0x28] sm:$0xff]  }
  0x61   :  { %537 = vmatprep.subr.bf16.mxu0 %v778_v0  ;;  %557 = vmatprep.subr.bf16.mxu1 %v778_v0  ;;  %v209_v25 = vld [vmem:[#allocation5] sm:$0xff]  ;;  %v476_v26 = vld [vmem:[%s949_s3] ss:$0 sm:$0xff] }
  0x62   :  { %v210_v27 = vand.u32 1, %v209_v25  ;;  %v625_v36 = vld [vmem:[#allocation10 + $0x30] sm:$0xff]   ;;  %v626_v37 = vld [vmem:[#allocation10 + $0x38] sm:$0xff]   ;;  %v212_v38 = vand.u32 2, %v209_v25 }
  0x63   :  { %v485_v39 = vld [vmem:[%s951_s5] ss:$0 sm:$0xff]  ;;  %s780_s5 = smov [#allocation11]  }
  0x64   :  { %538 = vmatpush3.bf16.msra.mxu0 %v605_v3  ;;  %558 = vmatpush3.bf16.msra.mxu1 %v613_v8  ;;  %vm211_vm1 = vcmp.ne.s32.totalorder %v210_v27, 0  ;;  %vm213_vm3 = vcmp.ne.s32.totalorder %v212_v38, 0  ;;  %v497_v51 = vld [vmem:[%s953_s7] ss:$0 sm:$0xff]  ;;  %s465_s7 = sshll.u32 %s780_s5, 4  ;;  %s466_s7 = int_to_ptr.vmem [resolvable:$true] %s465_s7 }
  0x65   :  { %539 = vmatprep.subr.bf16.mxu0 %v778_v0  ;;  %559 = vmatprep.subr.bf16.mxu1 %v778_v0  ;;  %vm494_vm2 = vmpackc.low %vm211_vm1, %vm211_vm1  ;;  %s741_s22 = scalar_lea.vmem %s466_s7, 128  ;;  %p746_p13 = scmp.lt.s32.totalorder %s466_s7, %s466_s7 }
  0x66   :  { %p742_p12 = scmp.ne.s32.totalorder %s466_s7, %s741_s22  ;;  %p747_p0 = scmp.lt.s32.totalorder %s741_s22, %s741_s22 }
  0x68   :  { %540 = vmatpush3.bf16.msra.mxu0 %v606_v5  ;;  %560 = vmatpush3.bf16.msra.mxu1 %v614_v10  ;;  %p748_p1 = por %p747_p0, %p746_p13 }
  0x69   :  { %541 = vmatprep.subr.bf16.mxu0 %v778_v0  ;;  %561 = vmatprep.subr.bf16.mxu1 %v778_v0 }
  0x6a   :  { %p749_p2 = pnand %p748_p1, %p742_p12 }
  0x6c   :  { %542 = vmatpush3.bf16.msra.mxu0 %v607_v7  ;;  %562 = vmatpush3.bf16.msra.mxu1 %v615_v12 }
  0x6d   :  { %543 = vmatprep.subr.bf16.mxu0 %v778_v0  ;;  %563 = vmatprep.subr.bf16.mxu1 %v778_v0 }
  0x70   :  { %544 = vmatpush3.bf16.msra.mxu0 %v608_v9  ;;  %564 = vmatpush3.bf16.msra.mxu1 %v616_v15 }
  0x71   :  { %545 = vmatprep.subr.bf16.mxu0 %v778_v0  ;;  %565 = vmatprep.subr.bf16.mxu1 %v778_v0 }
  0x74   :  { %546 = vmatpush3.bf16.msra.mxu0 %v609_v11  ;;  %566 = vmatpush3.bf16.msra.mxu1 %v617_v17 }
  0x75   :  { %547 = vmatprep.subr.bf16.mxu0 %v778_v0  ;;  %567 = vmatprep.subr.bf16.mxu1 %v778_v0 }
  0x78   :  { %548 = vmatpush3.bf16.msra.mxu0 %v610_v13  ;;  %568 = vmatpush3.bf16.msra.mxu1 %v618_v18 }
  0x79   :  { %573 = vmatprep.subr.bf16.mxu0 %v778_v0 }
  0x7b   :  { %550 = vmatmul.mubr.bf16.vlgmr.msra.gmra.mrb[0].mxu0 %v96_v16 }
  0x7c   :  { %589 = vmatprep.mubr.msk.bf16.mxu0 %vm779_vm0, %v778_v0  ;;  %574 = vmatpush3.bf16.msra.mxu0 %v619_v19 }
  0x7d   :  { %575 = vmatprep.subr.bf16.mxu0 %v778_v0 }
  0x80   :  { %576 = vmatpush3.bf16.msra.mxu0 %v620_v20 }
  0x81   :  { %577 = vmatprep.subr.bf16.mxu0 %v778_v0 }
  0x84   :  { %578 = vmatpush3.bf16.msra.mxu0 %v621_v21 }
  0x85   :  { %579 = vmatprep.subr.bf16.mxu0 %v778_v0 }
  0x88   :  { %580 = vmatpush3.bf16.msra.mxu0 %v622_v22 }
  0x89   :  { %581 = vmatprep.subr.bf16.mxu0 %v778_v0 }
  0x8c   :  { %582 = vmatpush3.bf16.msra.mxu0 %v623_v23 }
  0x8d   :  { %583 = vmatprep.subr.bf16.mxu0 %v778_v0 }
  0x90   :  { %584 = vmatpush3.bf16.msra.mxu0 %v624_v24 }
  0x91   :  { %585 = vmatprep.subr.bf16.mxu0 %v778_v0 }
  0x94   :  { %586 = vmatpush3.bf16.msra.mxu0 %v625_v36 }
  0x95   :  { %587 = vmatprep.subr.bf16.mxu0 %v778_v0 }
  0x98   :  { %588 = vmatpush3.bf16.msra.mxu0 %v626_v37 }
 0x14e   :  { %v202_v28 = vpop.f32.mrb[0].mxu0 }
 0x14f   :  { %v203_v29 = vadd.f32 %v476_v26, %v202_v28  ;;  %v551_v30 = vpop.f32.mrb[1].mxu0 }
 0x150   :  { %v205_v31 = vpop.f32.mrb[2].mxu0 }
 0x151   :  { %v208_v32 = vmax.f32 %v203_v29, 0.0  ;;  %v552_v33 = vpop.f32.mrb[3].mxu0 }
 0x153   :  { %v214_v34 = vadd.f32 %v208_v32, %v208_v32 }
 0x155   :  { %v495_v35 = vpack.c.bf16 %v214_v34, %v214_v34 }
 0x157   :  { %570 = vmatmul.mubr.msk.bf16.vlgmr.msra.gmra.mrb[0].mxu1 %vm494_vm2, %v495_v35 }
 0x22a   :  { %v322_v40 = vpop.f32.mrb[0].mxu1 }
 0x22b   :  { %v323_v41 = vadd.f32 %v485_v39, %v322_v40  ;;  %v571_v42 = vpop.f32.mrb[1].mxu1 }
 0x22c   :  { %v325_v43 = vpop.f32.mrb[2].mxu1 }
 0x22d   :  { %v328_v44 = vadd.f32 %v323_v41, %v323_v41  ;;  %v572_v45 = vpop.f32.mrb[3].mxu1 }
 0x22f   :  { %v329_v46 = vsel %vm213_vm3, %v328_v44, 0.0 }
 0x230   :  { %v330_v47 = vmax.f32 %v329_v46, 0.0 }
 0x232   :  { %v331_v48 = vpack.c.bf16 %v330_v47, %v330_v47 }
 0x234   :  { %590 = vmatmul.mubr.bf16.vlgmr.msra.gmra.mrb[4].mxu0 %v331_v48 }
 0x307   :  { %v437_v52 = vpop.f32.mrb[4].mxu0 }
 0x308   :  { %v438_v53 = vadd.f32 %v497_v51, %v437_v52  ;;  %v591_v54 = vpop.f32.mrb[5].mxu0 }
 0x309   :  { %v440_v55 = vpop.f32.mrb[6].mxu0 }
 0x30a   :  { %v592_v56 = vpop.f32.mrb[7].mxu0  ;;  %v446_v57 = vsel %vm445_vm4, %v438_v53, -1e+30 }
 0x30b   :  { %447 = vmax.xlane.f32.xlu0 %v446_v57 }
 0x398   :  { %v448_v58 = vpop.xlane.xlu0 %447 }
 0x399   :  { %v449_v59 = vsub.f32 %v446_v57, %v448_v58 }
 0x39b   :  { %v450_v60 = vmul.f32 1.442695, %v449_v59 }
 0x39d   :  { %627 = vpow2.f32 %v450_v60 }
 0x3a7   :  { %v628_v61 = vpop.eup %627 }
 0x3a8   :  { %452 = vadd.xlane.f32.xlu0 %v628_v61 }
 0x435   :  { %v453_v62 = vpop.xlane.xlu0 %452 }
 0x436   :  { %629 = vlog2.f32 %v453_v62 }
 0x440   :  { %v630_v63 = vpop.eup %629 }
 0x441   :  { %v455_v0 = vmul.f32 0.6931472, %v630_v63 }
 0x443   :  { %v456_v1 = vadd.f32 %v455_v0, %v448_v58 }
 0x445   :  { %v457_v2 = vsub.f32 %v446_v57, %v456_v1 }
 0x447   :  { %458 = vst [vmem:[#allocation11] sm:$0xff] %v457_v2 }
 0x448   :  { %752 = shalt.err (!%p749_p2)
}
 0x449   :  { %s753_s25 = scalar_lea.hbm %s954_s8, 128 }
 0x44a   :  { %p754_p3 = scmp.ne.s32.totalorder %s954_s8, %s753_s25  ;;  %p757_p4 = scmp.lt.u32.totalorder %s753_s25, %s954_s8 }
 0x44c   :  { %p759_p5 = pnand %p757_p4, %p754_p3 }
 0x44e   :  { %762 = shalt.err (!%p759_p5)
}
 0x44f   :  { %468 = dma.vmem_to_hbm [thread:$0]  %s466_s7, 128, %s954_s8, [#allocation4]  }
 0x450   :  { %769 = dma.done.wait [#allocation4], 128  }
 0x451   :  { %770 = vsyncadd [#allocation4], 4294967168 }
 0x452   :  { %472 = vsyncpa [#allocation3], 1 }
 0x453   :  { %473 = vsyncpa [#allocation6], 1 }
 0x454   :  { %474 = vsyncpa [#allocation9], 1 }
 0x455   :  { %475 = vsyncpa [#allocation4], 1 }

</bundles_post_ra>
